<compile_context>
chip_gen: v6e
topology: v6e:2x2x1
jax: 0.10.0
libtpu: 0.0.40
codegen_flags: <defaults>
</compile_context>

<pallas_src>
import math
from functools import partial

import jax
import jax.numpy as jnp
from jax.experimental import pallas as pl
from jax.experimental.pallas import tpu as pltpu

LN_EPS = 1e-5          # torch.nn.LayerNorm default eps
MASK_VAL = -1e4        # additive mask value used by the GPT2 reference attention
HEAD_SCALE = 1e-4      # LowRankPerturbedLinear default scale


# ---------------------------------------------------------------------------
# helpers
# ---------------------------------------------------------------------------
def _layernorm(x, g, b):
    mean = jnp.mean(x, axis=-1, keepdims=True)
    var = jnp.mean((x - mean) ** 2, axis=-1, keepdims=True)
    return (x - mean) * jax.lax.rsqrt(var + LN_EPS) * g + b


def _vmem_cap_bytes():
    # Never request more than ~75% of the physical per-core VMEM (v7x: 64 MiB).
    try:
        return int(pltpu.get_tpu_info().vmem_capacity_bytes * 3 // 4)
    except Exception:
        return 48 * 2**20          # conservative: valid on v5e/v6e/v7x


def _vmem_limit_bytes(*arrays):
    nbytes = sum(int(a.size) * a.dtype.itemsize for a in arrays)
    return int(min(_vmem_cap_bytes(), max(32 * 2**20, 2 * nbytes + (8 << 20))))


def _const_spec(arr, buffers=1):
    """Full-array BlockSpec with grid-invariant index map, single-buffered."""
    nd, shape = arr.ndim, arr.shape
    index_map = lambda *_: (0,) * nd
    try:
        return pl.BlockSpec(shape, index_map, pipeline_mode=pl.Buffered(buffers))
    except Exception:              # jax without BlockSpec.pipeline_mode
        return pl.BlockSpec(shape, index_map)


def _streamed_spec(block_shape, index_map, buffers):
    try:
        return pl.BlockSpec(block_shape, index_map,
                            pipeline_mode=pl.Buffered(buffers))
    except Exception:
        return pl.BlockSpec(block_shape, index_map)


def _full_spec(shape):
    nd = len(shape)
    return pl.BlockSpec(shape, lambda *_: (0,) * nd)


# ---------------------------------------------------------------------------
# per-layer kernel 1: pre-LN fused QKV projection -> single bf16 buffer
# ---------------------------------------------------------------------------
def qkv_proj_kernel(x_ref, lng, lnb, wqkv, bqkv, qkv_ref):
    a = _layernorm(x_ref[0], lng[...], lnb[...])          # (S, D) f32
    # one (S,D)x(D,3D) MXU matmul; bias add fused into the bf16 cast/store, so
    # only ONE (S,3D) buffer is materialized (v5e has a single vst slot).
    qkv_ref[0] = (jnp.dot(a.astype(jnp.bfloat16), wqkv[...],
                          preferred_element_type=jnp.float32)
                  + bqkv[...]).astype(jnp.bfloat16)


def run_qkv_proj(x, lng, lnb, wqkv, bqkv):
    B, S, D = x.shape
    return pl.pallas_call(
        qkv_proj_kernel,
        out_shape=jax.ShapeDtypeStruct((B, S, 3 * D), jnp.bfloat16),
        grid=(B,),
        in_specs=[pl.BlockSpec((1, S, D), lambda b: (b, 0, 0)),
                  _const_spec(lng), _const_spec(lnb),
                  _const_spec(wqkv), _const_spec(bqkv)],
        out_specs=pl.BlockSpec((1, S, 3 * D), lambda b: (b, 0, 0)),
        compiler_params=pltpu.CompilerParams(
            dimension_semantics=("parallel",),
            vmem_limit_bytes=_vmem_limit_bytes(x, wqkv, bqkv)),
    )(x, lng, lnb, wqkv, bqkv)


# ---------------------------------------------------------------------------
# per-layer kernel 2: flash-style attention (online softmax over k tiles,
# head-major batched matmuls) + out-projection + residual + pre-LN FFN
# ---------------------------------------------------------------------------
def attn_ffn_kernel(x_ref, q_ref, k_ref, v_ref, neg_ref,
                    wo, bo, lnf_g, lnf_b, w1, b1, w2, b2,
                    o_ref, m_sc, l_sc, acc_sc, *, heads, scale):
    ki = pl.program_id(2)

    @pl.when(ki == 0)
    def _():
        m_sc[...] = jnp.full(m_sc.shape, -jnp.inf, dtype=m_sc.dtype)
        l_sc[...] = jnp.zeros(l_sc.shape, dtype=l_sc.dtype)
        acc_sc[...] = jnp.zeros(acc_sc.shape, dtype=acc_sc.dtype)

    q = q_ref[0]                                  # (H, tq, dh) bf16
    k = k_ref[0]                                  # (H, tk, dh) bf16
    v = v_ref[0]                                  # (H, tk, dh) bf16

    # all H QK^T matmuls issue back-to-back (batched einsum), f32 accumulate
    s = jnp.einsum('hqd,hkd->hqk', q, k,
                   preferred_element_type=jnp.float32) * scale
    s = s + neg_ref[0]                            # (1, tk) pre-scaled pad mask

    m_prev = m_sc[...]
    m_new = jnp.maximum(m_prev, jnp.max(s, axis=-1, keepdims=True))
    alpha = jnp.exp(m_prev - m_new)
    p = jnp.exp(s - m_new)
    l_sc[...] = alpha * l_sc[...] + jnp.sum(p, axis=-1, keepdims=True)
    acc_sc[...] = alpha * acc_sc[...] + jnp.einsum(
        'hqk,hkd->hqd', p.astype(jnp.bfloat16), v,
        preferred_element_type=jnp.float32)
    m_sc[...] = m_new

    @pl.when(ki == pl.num_programs(2) - 1)
    def _():
        # pl.reciprocal(approx=True): EUP slot, small relative error vs exact
        # softmax (inference tolerance, not exact-match).
        out_h = (acc_sc[...] * pl.reciprocal(l_sc[...], approx=True)
                 ).astype(jnp.bfloat16)                      # (H, tq, dh)
        concat = jnp.concatenate([out_h[h] for h in range(heads)], axis=-1)
        # out-projection stays one large (tq,D)x(D,D) MXU matmul
        attn = jnp.dot(concat, wo[...],
                       preferred_element_type=jnp.float32) + bo[...]
        x = x_ref[0] + attn                        # attention residual (f32)

        f = _layernorm(x, lnf_g[...], lnf_b[...])
        h1 = jnp.dot(f.astype(jnp.bfloat16), w1[...],
                     preferred_element_type=jnp.float32) + b1[...]
        h1 = h1 * jax.nn.sigmoid(h1)               # Swish (f32)
        h2 = jnp.dot(h1.astype(jnp.bfloat16), w2[...],
                     preferred_element_type=jnp.float32) + b2[...]
        o_ref[0] = x + h2                          # FFN residual (dropout=id)


def run_transformer_layer(x, neg_mask, layer_params, heads,
                          *, q_tile=128, k_tile=128):
    (lna_g, lna_b, wqkv, bqkv, wo, bo,
     lnf_g, lnf_b, w1, b1, w2, b2) = layer_params
    B, S, D = x.shape
    assert D % heads == 0
    dh = D // heads

    # kernel 1: LN + fused QKV projection, bf16 output
    qkv = run_qkv_proj(x, lna_g, lna_b, wqkv, bqkv)          # (B, S, 3D) bf16

    # head-major layout plumbing in the wrapper (cheap XLA relayout; keeps the
    # kernel free of per-head slicing / lane shuffles on its inputs)
    def split_heads(t):
        return t.reshape(B, S, heads, dh).transpose(0, 2, 1, 3)  # (B,H,S,dh)
    q, k, v = [split_heads(t) for t in jnp.split(qkv, 3, axis=-1)]

    tq = S if S <= q_tile else q_tile
    tk = S if S <= k_tile else k_tile
    assert S % tq == 0 and S % tk == 0   # TODO(synk): ragged sequence tiles

    scale = 1.0 / math.sqrt(dh)
    weights = (wo, bo, lnf_g, lnf_b, w1, b1, w2, b2)

    in_specs = [
        pl.BlockSpec((1, tq, D), lambda b, qi, ki: (b, qi, 0)),
        pl.BlockSpec((1, heads, tq, dh), lambda b, qi, ki: (b, 0, qi, 0)),
        pl.BlockSpec((1, heads, tk, dh), lambda b, qi, ki: (b, 0, ki, 0)),
        pl.BlockSpec((1, heads, tk, dh), lambda b, qi, ki: (b, 0, ki, 0)),
        pl.BlockSpec((1, 1, tk), lambda b, qi, ki: (b, 0, ki)),
    ] + [_const_spec(w) for w in weights]          # single-buffered weights

    return pl.pallas_call(
        partial(attn_ffn_kernel, heads=heads, scale=scale),
        out_shape=jax.ShapeDtypeStruct((B, S, D), jnp.float32),
        grid=(B, S // tq, S // tk),
        in_specs=in_specs,
        out_specs=pl.BlockSpec((1, tq, D), lambda b, qi, ki: (b, qi, 0)),
        scratch_shapes=[pltpu.VMEM((heads, tq, 1), jnp.float32),   # running max
                        pltpu.VMEM((heads, tq, 1), jnp.float32),   # running sum
                        pltpu.VMEM((heads, tq, dh), jnp.float32)], # acc
        compiler_params=pltpu.CompilerParams(
            dimension_semantics=("parallel", "parallel", "arbitrary"),
            vmem_limit_bytes=_vmem_limit_bytes(x, q, k, v, neg_mask, *weights)),
    )(x, q, k, v, neg_mask, *weights)


# ---------------------------------------------------------------------------
# LM head: ln_head + LowRankPerturbedLinear, rows flattened to (B*S, D).
#   prologue : xn = LN(x) (bf16), r = xn @ R (bf16)   -- computed once
#   main     : out[:, j] = scale * r @ L[:, j] + xn @ Wcore[:, j]
# vocab is the single grid axis -> every Wcore/L column tile is DMA'd once.
# ---------------------------------------------------------------------------
def head_prologue_kernel(x_ref, lng, lnb, wr, xn_ref, r_ref):
    xn = _layernorm(x_ref[...], lng[...], lnb[...]).astype(jnp.bfloat16)
    xn_ref[...] = xn
    r_ref[...] = jnp.dot(xn, wr[...],
                         preferred_element_type=jnp.float32).astype(jnp.bfloat16)


def head_matmul_kernel(xn_ref, r_ref, wcore_ref, wl_ref, o_ref, *, scale):
    core = jnp.dot(xn_ref[...], wcore_ref[...],
                   preferred_element_type=jnp.float32)
    lr = jnp.dot(r_ref[...], wl_ref[...], preferred_element_type=jnp.float32)
    o_ref[...] = (scale * lr + core).astype(o_ref.dtype)


def run_head(x, head_params, vocab_padded, *, scale=HEAD_SCALE,
             vocab_tile=1024, out_dtype=jnp.float32):
    # out_dtype=jnp.bfloat16 halves the store-bound logits writeback if the
    # downstream loss/sampling tolerates it; f32 kept by default (ref parity).
    B, S, D = x.shape
    lng, lnb, wcore, wr, wl = head_params
    rank = wr.shape[1]
    M = B * S
    x2 = x.reshape(M, D)
    # TODO(synk): tile the row axis (vocab outer) once B*S is large enough
    #             that (M, D) bf16 no longer fits VMEM.

    xn, r = pl.pallas_call(
        head_prologue_kernel,
        out_shape=(jax.ShapeDtypeStruct((M, D), jnp.bfloat16),
                   jax.ShapeDtypeStruct((M, rank), jnp.bfloat16)),
        grid=(1,),
        in_specs=[_const_spec(x2), _const_spec(lng),
                  _const_spec(lnb), _const_spec(wr)],
        out_specs=(_full_spec((M, D)), _full_spec((M, rank))),
        compiler_params=pltpu.CompilerParams(
            dimension_semantics=("arbitrary",),
            vmem_limit_bytes=_vmem_limit_bytes(x2, wr)),
    )(x2, lng, lnb, wr)

    tn = min(vocab_padded, vocab_tile)
    assert tn % 128 == 0 and vocab_padded % tn == 0
    nvt = vocab_padded // tn
    stream_bufs = 3 if nvt >= 3 else 2      # deeper prefetch on long vocab grid

    logits = pl.pallas_call(
        partial(head_matmul_kernel, scale=scale),
        out_shape=jax.ShapeDtypeStruct((M, vocab_padded), out_dtype),
        grid=(nvt,),
        in_specs=[
            _const_spec(xn),                                   # fetched once
            _const_spec(r),                                    # fetched once
            _streamed_spec((D, tn), lambda j: (0, j), stream_bufs),
            _streamed_spec((rank, tn), lambda j: (0, j), stream_bufs),
        ],
        out_specs=pl.BlockSpec((M, tn), lambda j: (0, j)),     # lane-dense
        compiler_params=pltpu.CompilerParams(
            dimension_semantics=("parallel",),
            vmem_limit_bytes=_vmem_limit_bytes(xn, r, wcore, wl)),
    )(xn, r, wcore, wl)
    return logits.reshape(B, S, vocab_padded)


# ---------------------------------------------------------------------------
# deterministic parameter construction (synthetic weights, no checkpoints)
# ---------------------------------------------------------------------------
def init_params(key, *, layers, words, seq_len, dims, rate, rank, vocab_padded):
    def nrm(k, shape, dtype=jnp.float32):
        return (0.02 * jax.random.normal(k, shape)).astype(dtype)

    keys = iter(jax.random.split(key, 2 + layers * 4 + 3))
    params = {
        "tok_emb": nrm(next(keys), (words, dims)),
        "pos_emb": nrm(next(keys), (seq_len, dims)),
        "layers": [],
    }
    ones = jnp.ones((1, dims), jnp.float32)
    zeros = jnp.zeros((1, dims), jnp.float32)
    for _ in range(layers):
        lp = (
            ones, zeros,                                          # ln_attn g/b
            nrm(next(keys), (dims, 3 * dims), jnp.bfloat16),      # fused Wqkv^T
            jnp.zeros((1, 3 * dims), jnp.float32),                # fused b_qkv
            nrm(next(keys), (dims, dims), jnp.bfloat16),          # out-proj W^T
            zeros,                                                # out-proj b
            ones, zeros,                                          # ln_ff g/b
            nrm(next(keys), (dims, dims * rate), jnp.bfloat16),   # ff W1^T
            jnp.zeros((1, dims * rate), jnp.float32),             # ff b1
            nrm(next(keys), (dims * rate, dims), jnp.bfloat16),   # ff W2^T
            zeros,                                                # ff b2
        )
        params["layers"].append(lp)

    def pad_vocab(w):   # zero-pad the vocab (lane) axis up to a 128 multiple
        return jnp.pad(w, ((0, 0), (0, vocab_padded - words)))

    params["head"] = (
        ones, zeros,                                                    # ln_head
        pad_vocab(nrm(next(keys), (dims, words))).astype(jnp.bfloat16),   # core
        nrm(next(keys), (dims, rank), jnp.bfloat16),                      # R
        pad_vocab(nrm(next(keys), (rank, words))).astype(jnp.bfloat16),   # L
    )
    return params


# ---------------------------------------------------------------------------
if __name__ == "__main__":
    # NOTE: toy shapes for correctness only; benchmark with D % 128 == 0 and
    # S a multiple of the q/k tile so stores are lane-dense and unmasked.
    B, S, D, H, LAYERS, RATE = 2, 8, 32, 4, 2, 4
    WORDS, PAD_IDX, LM_RANK = 64, 0, 8
    VPAD = ((WORDS + 127) // 128) * 128

    key = jax.random.PRNGKey(0)
    k_tok, k_par = jax.random.split(key)
    tokens = jax.random.randint(k_tok, (B, S), 0, WORDS, dtype=jnp.int32)

    params = init_params(k_par, layers=LAYERS, words=WORDS, seq_len=S,
                         dims=D, rate=RATE, rank=LM_RANK, vocab_padded=VPAD)

    # ---- glue in plain JAX (embedding gather, pad mask, offset=0 / no past) --
    x = params["tok_emb"][tokens] + params["pos_emb"][:S][None, :, :]
    # dropout_embedding: identity in eval mode.
    # Additive pad mask (keys only), pre-scaled once; shape (B,1,S).
    neg_mask = ((tokens == PAD_IDX).astype(jnp.float32) * MASK_VAL
                ).reshape(B, 1, S)
    # bidirectional=True (module default): no causal/future-mask term.
    # TODO(synk): past-KV concatenation path not exercised (past=None, offset=0).

    # ---- hot path: per-layer fused Pallas kernels -------------------------
    # TODO(synk): prefetch layer i+1 weights across pallas_call boundaries
    #             (P10 cross-call futures) to hide the cold weight-DMA ramp.
    for lp in params["layers"]:
        x = run_transformer_layer(x, neg_mask, lp, H)

    logits = run_head(x, params["head"], VPAD)[..., :WORDS]
    logits = jax.block_until_ready(logits)

    assert logits.shape == (B, S, WORDS)
    assert bool(jnp.all(jnp.isfinite(logits)))
    print("KERNEL_OK")
</pallas_src>

<mosaic_0001>
module attributes {stable_mosaic.version = 11 : i64} {
  func.func @qkv_proj_kernel(%arg0: i32, %arg1: memref<1x8x32xf32, #tpu.memory_space<vmem>>, %arg2: memref<1x32xf32, #tpu.memory_space<vmem>>, %arg3: memref<1x32xf32, #tpu.memory_space<vmem>>, %arg4: memref<32x96xbf16, #tpu.memory_space<vmem>>, %arg5: memref<1x96xf32, #tpu.memory_space<vmem>>, %arg6: memref<1x8x96xbf16, #tpu.memory_space<vmem>>) attributes {dimension_semantics = [#tpu.dimension_semantics<parallel>], iteration_bounds = array<i64: 2>, scalar_prefetch = 0 : i64, scratch_operands = 0 : i64, tpu.core_type = #tpu.core_type<tc>, window_params = [{transform_indices = @transform_0, window_bounds = array<i64: 1, 8, 32>}, {pipeline_mode = #tpu.pipeline_mode<synchronous>, transform_indices = @transform_1, window_bounds = array<i64: 1, 32>}, {pipeline_mode = #tpu.pipeline_mode<synchronous>, transform_indices = @transform_2, window_bounds = array<i64: 1, 32>}, {pipeline_mode = #tpu.pipeline_mode<synchronous>, transform_indices = @transform_3, window_bounds = array<i64: 32, 96>}, {pipeline_mode = #tpu.pipeline_mode<synchronous>, transform_indices = @transform_4, window_bounds = array<i64: 1, 96>}, {transform_indices = @transform_5, window_bounds = array<i64: 1, 8, 96>}]} {
    %c0 = arith.constant 0 : index
    %c0_0 = arith.constant 0 : index
    %c0_1 = arith.constant 0 : index
    %0 = vector.load %arg1[%c0, %c0_0, %c0_1] : memref<1x8x32xf32, #tpu.memory_space<vmem>>, vector<1x8x32xf32>
    %1 = vector.shape_cast %0 : vector<1x8x32xf32> to vector<8x32xf32>
    %c0_2 = arith.constant 0 : index
    %c0_3 = arith.constant 0 : index
    %2 = vector.load %arg2[%c0_2, %c0_3] : memref<1x32xf32, #tpu.memory_space<vmem>>, vector<1x32xf32>
    %c0_4 = arith.constant 0 : index
    %c0_5 = arith.constant 0 : index
    %3 = vector.load %arg3[%c0_4, %c0_5] : memref<1x32xf32, #tpu.memory_space<vmem>>, vector<1x32xf32>
    %cst = arith.constant dense<0.000000e+00> : vector<8xf32>
    %4 = vector.multi_reduction <add>, %1, %cst [1] : vector<8x32xf32> to vector<8xf32>
    %5 = vector.shape_cast %4 : vector<8xf32> to vector<8x1xf32>
    %cst_6 = arith.constant 3.200000e+01 : f32
    %6 = vector.broadcast %cst_6 : f32 to vector<8x1xf32>
    %7 = arith.divf %5, %6 : vector<8x1xf32>
    %8 = vector.broadcast %7 : vector<8x1xf32> to vector<8x32xf32>
    %9 = arith.subf %1, %8 : vector<8x32xf32>
    %10 = arith.mulf %9, %9 : vector<8x32xf32>
    %cst_7 = arith.constant dense<0.000000e+00> : vector<8xf32>
    %11 = vector.multi_reduction <add>, %10, %cst_7 [1] : vector<8x32xf32> to vector<8xf32>
    %12 = vector.shape_cast %11 : vector<8xf32> to vector<8x1xf32>
    %cst_8 = arith.constant 3.200000e+01 : f32
    %13 = vector.broadcast %cst_8 : f32 to vector<8x1xf32>
    %14 = arith.divf %12, %13 : vector<8x1xf32>
    %15 = vector.broadcast %7 : vector<8x1xf32> to vector<8x32xf32>
    %16 = arith.subf %1, %15 : vector<8x32xf32>
    %cst_9 = arith.constant 9.99999974E-6 : f32
    %17 = vector.broadcast %cst_9 : f32 to vector<8x1xf32>
    %18 = arith.addf %14, %17 : vector<8x1xf32>
    %19 = math.rsqrt %18 : vector<8x1xf32>
    %20 = vector.broadcast %19 : vector<8x1xf32> to vector<8x32xf32>
    %21 = arith.mulf %16, %20 : vector<8x32xf32>
    %22 = vector.broadcast %2 : vector<1x32xf32> to vector<8x32xf32>
    %23 = arith.mulf %21, %22 : vector<8x32xf32>
    %24 = vector.broadcast %3 : vector<1x32xf32> to vector<8x32xf32>
    %25 = arith.addf %23, %24 : vector<8x32xf32>
    %26 = arith.truncf %25 : vector<8x32xf32> to vector<8x32xbf16>
    %c0_10 = arith.constant 0 : index
    %c0_11 = arith.constant 0 : index
    %27 = vector.load %arg4[%c0_10, %c0_11] : memref<32x96xbf16, #tpu.memory_space<vmem>>, vector<32x96xbf16>
    %cst_12 = arith.constant dense<0.000000e+00> : vector<8x96xf32>
    %28 = tpu.matmul %26, %27, %cst_12 {dimension_numbers = #tpu.dot_dimension_numbers<[1], [0], [0], [1], [0, 0, 1, 1], [], []>} : vector<8x32xbf16>, vector<32x96xbf16>, vector<8x96xf32> -> vector<8x96xf32>
    %c0_13 = arith.constant 0 : index
    %c0_14 = arith.constant 0 : index
    %29 = vector.load %arg5[%c0_13, %c0_14] : memref<1x96xf32, #tpu.memory_space<vmem>>, vector<1x96xf32>
    %30 = vector.broadcast %29 : vector<1x96xf32> to vector<8x96xf32>
    %31 = arith.addf %28, %30 : vector<8x96xf32>
    %32 = arith.truncf %31 : vector<8x96xf32> to vector<8x96xbf16>
    %c0_15 = arith.constant 0 : index
    %c0_16 = arith.constant 0 : index
    %c0_17 = arith.constant 0 : index
    %33 = vector.load %arg6[%c0_15, %c0_16, %c0_17] : memref<1x8x96xbf16, #tpu.memory_space<vmem>>, vector<1x8x96xbf16>
    %34 = vector.shape_cast %33 : vector<1x8x96xbf16> to vector<8x96xbf16>
    %35 = vector.shape_cast %32 : vector<8x96xbf16> to vector<1x8x96xbf16>
    tpu.vector_store %arg6[%c0_15, %c0_16, %c0_17], %35 {strides = array<i32>} : memref<1x8x96xbf16, #tpu.memory_space<vmem>>, vector<1x8x96xbf16>,
    return
  }
  func.func @transform_0(%arg0: i32) -> (i32, i32, i32) {
    %c0_i32 = arith.constant 0 : i32
    %c0_i32_0 = arith.constant 0 : i32
    %c0_i32_1 = arith.constant 0 : i32
    return %arg0, %c0_i32, %c0_i32_0 : i32, i32, i32
  }
  func.func @transform_1(%arg0: i32) -> (i32, i32) {
    %c0_i32 = arith.constant 0 : i32
    %c0_i32_0 = arith.constant 0 : i32
    %c0_i32_1 = arith.constant 0 : i32
    return %c0_i32, %c0_i32_0 : i32, i32
  }
  func.func @transform_2(%arg0: i32) -> (i32, i32) {
    %c0_i32 = arith.constant 0 : i32
    %c0_i32_0 = arith.constant 0 : i32
    %c0_i32_1 = arith.constant 0 : i32
    return %c0_i32, %c0_i32_0 : i32, i32
  }
  func.func @transform_3(%arg0: i32) -> (i32, i32) {
    %c0_i32 = arith.constant 0 : i32
    %c0_i32_0 = arith.constant 0 : i32
    %c0_i32_1 = arith.constant 0 : i32
    return %c0_i32, %c0_i32_0 : i32, i32
  }
  func.func @transform_4(%arg0: i32) -> (i32, i32) {
    %c0_i32 = arith.constant 0 : i32
    %c0_i32_0 = arith.constant 0 : i32
    %c0_i32_1 = arith.constant 0 : i32
    return %c0_i32, %c0_i32_0 : i32, i32
  }
  func.func @transform_5(%arg0: i32) -> (i32, i32, i32) {
    %c0_i32 = arith.constant 0 : i32
    %c0_i32_0 = arith.constant 0 : i32
    %c0_i32_1 = arith.constant 0 : i32
    return %arg0, %c0_i32, %c0_i32_0 : i32, i32, i32
  }
}

</mosaic_0001>

<bundles_post_ra>
// kernel: tpu_custom_call.1
= control target key start
LH: loop header
LB: loop body
LE: loop exit
PB: predicated region body
PF: predicated region fallthrough
CT: control target
= control target key end

     0   :  { %10 = vsyncpa [#allocation3], 0  ;;  %s888_s0 = inlined_call_operand.hbm [shape: f32[2,8,32], index: 0, kind: input, shape index: {}]   ;;  %s889_s1 = inlined_call_operand.vmem [shape: f32[1,32], index: 1, kind: input, shape index: {}]   ;;  %s890_s2 = inlined_call_operand.vmem [shape: f32[1,32], index: 2, kind: input, shape index: {}]   ;;  %s891_s3 = inlined_call_operand.hbm [shape: bf16[32,96], index: 3, kind: input, shape index: {}]   ;;  %s892_s4 = inlined_call_operand.vmem [shape: f32[1,96], index: 4, kind: input, shape index: {}]   ;;  %s893_s5 = inlined_call_operand.hbm [shape: bf16[2,8,96], index: 5, kind: output, shape index: {}]  }
   0x1   :  { %12 = vsyncpa [#allocation3 + $0x1], 0 }
   0x2   :  { %13 = vsyncpa [#allocation6], 0 }
   0x3   :  { %14 = vsyncpa [#allocation4], 0 }
   0x4   :  { %16 = vsyncpa [#allocation4 + $0x1], 0  ;;  %s709_s18 = smov 0   ;;  %s711_s19 = smov 0  }
   0x5   :  { %s713_s20 = smov 0   ;;  %s715_s21 = smov 0  }
   0x6 LB: > { %s730_s22 = sadd.s32 4294967295, %s670_s21   ;;  %s452_s23 = sadd.s32 4294967294, %s670_s21   ;;  %s670_s21 = sphi %s715_s21, %s915_s21   ;;  %s666_s20 = sphi %s713_s20, %s914_s20   ;;  %s662_s19 = sphi %s711_s19, %s913_s19   ;;  %s658_s18 = sphi %s709_s18, %s912_s18  }
   0x7   : > { %p42_p0 = scmp.ne.s32.totalorder %s662_s19, %s658_s18  ;;  %p894_p1 = scmp.eq.s32.totalorder %s730_s22, 0 }
   0x8   : > { %p156_p3 = scmp.eq.s32.totalorder %s452_s23, 1  ;;  %p453_p5 = scmp.ge.s32.totalorder %s670_s21, 1 }
   0x9   : > { %p739_p4 = por %p894_p1, %p42_p0  ;;  %p163_p7 = scmp.lt.s32.totalorder %s670_s21, 3 }
   0xa   : > { %p744_p6 = por %p156_p3, %p42_p0  ;;  %s672_s27 = smov [#allocation5]  }
   0xb   : > { %s898_s24 = scalar_select %p739_p4, 1, 0 }
   0xc   : > { %s899_s25 = scalar_select %p744_p6, 1, 0 }
   0xd   : > { %p749_p8 = pnand %p453_p5, %p163_p7  ;;  %s181_s28 = sshll.u32 %s672_s27, 4  ;;  %s182_s28 = int_to_ptr.vmem [resolvable:$true] %s181_s28 }
   0xe   : > { %s763_s30 = sadd.s32 1, %s670_s21   ;;  %s29_s6 = sadd.s32 1, %s666_s20 }
   0xf   : > { %s900_s26 = scalar_select %p749_p8, 1, 0 }
  0x10   : > { %p491_p9 = pneg %p749_p8  ;;  %s26_s7 = ssub.s32 %s670_s21, %s763_s30 }
  0x11   : > { %s559_s8 = scalar_lea.vmem %s182_s28, 256  ;;  %p567_p5 = scmp.lt.s32.totalorder %s182_s28, %s182_s28 }
  0x12   : > { %p758_p11 = pnand %p491_p9, %p894_p1  ;;  %p560_p13 = scmp.ne.s32.totalorder %s182_s28, %s559_s8 }
  0x13   : > { %p568_p7 = scmp.lt.s32.totalorder %s559_s8, %s559_s8 }
  0x14   : > { %p550_p12 = pneg %p758_p11 }
  0x15   : > { %p569_p10 = por %p568_p7, %p567_p5 }
  0x16   : > { %p562_p0 = pnand %p560_p13, %p550_p12 }
  0x18   : > { %p563_p3 = pneg %p562_p0 }
  0x1a   : > { %p570_p2 = pnand %p569_p10, %p563_p3 }
  0x1c   : > { %573 = shalt.err (!%p570_p2)
}
  0x1d   : > { %s673_s9 = smov 64   ;;  %s674_s10 = smov 4  }
  0x1e   : > { %494 = dma.hbm_to_vmem [thread:$0]  (!%p758_p11), %s891_s3, 256, %s182_s28, [#allocation6], %s673_s9, %s673_s9, %s674_s10  }
  0x1f   : > { %p27_p9 = scmp.eq.s32.totalorder %s26_s7, 0  ;;  %p36_p12 = scmp.ne.s32.totalorder %s666_s20, %s662_s19 }
  0x20   : > { %p37_p10 = scmp.eq.s32.totalorder %s670_s21, 0  ;;  %p504_p2 = scmp.lt.s32.totalorder %s670_s21, 2 }
  0x21   : > { %s780_s13 = scalar_select %p27_p9, %s666_s20, %s29_s6  }
  0x22   : > { %p38_p13 = por %p37_p10, %p36_p12  ;;  %p902_p0 = scmp.eq.s32.totalorder %s730_s22, 1 }
  0x23   : > { %s198_s15 = sand.u32 1, %s666_s20   ;;  %s457_s16 = sshll.u32 %s670_s21, 7 }
  0x24   : > { %p784_p3 = por %p902_p0, %p36_p12  ;;  %s456_s17 = sshll.u32 %s198_s15, 3 }
  0x25   : > { %s793_s29 = scalar_lea.hbm %s888_s0, %s457_s16  ;;  %s202_s28 = scalar_lea.vmem [#allocation2], %s456_s17 }
  0x26   : > { %s903_s14 = scalar_select %p784_p3, 1, 0 }
  0x27   : > { %s209_s6 = sshll.u32 %s202_s28, 4  ;;  %p795_p11 = pnand %p504_p2, %p38_p13  ;;  %s210_s6 = int_to_ptr.vmem [resolvable:$true] %s209_s6 }
  0x28   : > { %s199_s8 = scalar_lea.sflag [#allocation3], %s198_s15  ;;  %s574_s9 = scalar_lea.hbm %s793_s29, 128 }
  0x29   : > { %p575_p5 = scmp.ne.s32.totalorder %s793_s29, %s574_s9  ;;  %p576_p7 = pneg %p795_p11 }
  0x2a   : > { %s579_s12 = scalar_lea.hbm %s888_s0, 256  ;;  %p580_p10 = scmp.lt.s32.totalorder %s793_s29, %s888_s0 }
  0x2b   : > { %p577_p9 = pnand %p576_p7, %p575_p5  ;;  %p581_p2 = scmp.lt.s32.totalorder %s579_s12, %s574_s9 }
  0x2d   : > { %p578_p12 = pneg %p577_p9  ;;  %p582_p13 = por %p581_p2, %p580_p10 }
  0x2f   : > { %p583_p0 = pnand %p582_p13, %p578_p12 }
  0x31   : > { %586 = shalt.err (!%p583_p0)
}
  0x32   : > { %s587_s23 = scalar_lea.vmem %s210_s6, 128  ;;  %s675_s15 = smov [#allocation2]  }
  0x33   : > { %p588_p1 = scmp.ne.s32.totalorder %s210_s6, %s587_s23  ;;  %s592_s27 = sshll.u32 %s675_s15, 4  ;;  %s593_s27 = int_to_ptr.vmem [resolvable:$false] %s592_s27 }
  0x34   : > { %s594_s28 = scalar_lea.vmem %s593_s27, 256  ;;  %p595_p5 = scmp.lt.s32.totalorder %s210_s6, %s593_s27 }
  0x35   : > { %p590_p6 = pnand %p588_p1, %p576_p7  ;;  %p596_p9 = scmp.lt.s32.totalorder %s594_s28, %s587_s23 }
  0x37   : > { %p591_p3 = pneg %p590_p6  ;;  %p597_p4 = por %p596_p9, %p595_p5 }
  0x39   : > { %p598_p8 = pnand %p597_p4, %p591_p3 }
  0x3b   : > { %601 = shalt.err (!%p598_p8)
}
  0x3c   : > { %498 = dma.hbm_to_vmem [thread:$0]  (!%p795_p11), %s793_s29, 128, %s210_s6, %s199_s8  }
  0x3d   : > { %p905_p12 = scmp.ne.s32.totalorder %s900_s26, 0 }
  0x3e   : > { %s816_s9 = sand.u32 (!%p905_p12), 1, %s662_s19   ;;  %p906_p1 = scmp.ne.s32.totalorder (!%p905_p12), %s898_s24, 0 }
  0x3f   : > { %218 = sbr.rel (%p905_p12) target bundleno = 594 (0x252), region = 40  ;;  %s459_s10 = sshll.u32 (!%p905_p12), %s816_s9, 3 }
  0x40   : > { %s221_s11 = scalar_lea.sflag (!%p905_p12), [#allocation3], %s816_s9  ;;  %s224_s12 = scalar_lea.vmem (!%p905_p12), [#allocation2], %s459_s10 }
  0x44   : > { %645 = dma.done.wait (%p906_p1), %s221_s11, 128  }
  0x45   : > { %647 = vsyncadd (%p906_p1), %s221_s11, 4294967168  ;;  %p907_p4 = scmp.eq.s32.totalorder %s730_s22, 0 }
  0x47   : > { %649 = dma.done.wait (%p907_p4), [#allocation6], 256   ;;  %p908_p6 = pmov %p907_p4 }
  0x48   : > { %vm259_vm0 = vcmask 261120   ;;  %v256_v0 = vld [vmem:[%s224_s12] sm:$0xff]  ;;  %v544_v7 = vld [vmem:[#allocation5 + $0x8] sm:$0xff]   ;;  %v676_v8 = vmov 0.0   ;;  %vm677_vm1 = vmmov 0   ;;  %v545_v9 = vld [vmem:[#allocation5] sm:$0xff]  }
  0x49   : > { %651 = vsyncadd (%p908_p6), [#allocation6], 4294967040  ;;  %v260_v1 = vsel %vm259_vm0, %v256_v0, 0.0  ;;  %475 = vmatprep.subr.bf16.mxu0 %v676_v8  ;;  %479 = vmatprep.mubr.msk.bf16.mxu0 %vm677_vm1, %v676_v8  ;;  %v462_v14 = vld [vmem:[%s889_s1] ss:$0 sm:$0xff]  ;;  %s461_s7 = sshll.u32 %s816_s9, 2 }
  0x4a   : > { %261 = vadd.xlane.f32.xlu0 %v260_v1  ;;  %476 = vmatpush3.bf16.msra.mxu0 %v544_v7  ;;  %v463_v16 = vld [vmem:[%s890_s2] ss:$0 sm:$0xff]  ;;  %s469_s17 = sshll.u32 %s730_s22, 6  ;;  %s254_s23 = scalar_lea.vmem [#allocation7], %s461_s7  ;;  %vm356_vm2 = vcmask 781312  }
  0x4b   : > { %477 = vmatprep.subr.bf16.mxu0 %v676_v8  ;;  %v464_v20 = vld [vmem:[%s892_s4] ss:$0 sm:$0xff]  ;;  %s372_s15 = sshll.u32 %s254_s23, 4  ;;  %s845_s10 = scalar_lea.hbm %s893_s5, %s469_s17  ;;  %s847_s15 = int_to_ptr.vmem [resolvable:$true] %s372_s15 }
  0x4c   : > { %s359_s22 = scalar_lea.sflag [#allocation4], %s816_s9  ;;  %s602_s11 = scalar_lea.vmem %s847_s15, 64 }
  0x4d   : > { %p603_p8 = scmp.ne.s32.totalorder %s847_s15, %s602_s11  ;;  %p909_p3 = scmp.ne.s32.totalorder %s903_s14, 0 }
  0x4e   : > { %478 = vmatpush3.bf16.msra.mxu0 %v545_v9  ;;  %s678_s12 = smov [#allocation7]  }
  0x4f   : > { %p604_p11 = pnand %p603_p8, %p909_p3  ;;  %s606_s24 = sshll.u32 %s678_s12, 4  ;;  %s607_s24 = int_to_ptr.vmem [resolvable:$false] %s606_s24 }
  0x50   : > { %s608_s26 = scalar_lea.vmem %s607_s24, 128  ;;  %p609_p10 = scmp.lt.s32.totalorder %s847_s15, %s607_s24 }
  0x51   : > { %p605_p7 = pneg %p604_p11  ;;  %p610_p2 = scmp.lt.s32.totalorder %s608_s26, %s602_s11 }
  0x53   : > { %p611_p13 = por %p610_p2, %p609_p10 }
  0x55   : > { %p612_p0 = pnand %p611_p13, %p605_p7 }
  0xd3   : > { %v262_v2 = vpop.xlane.xlu0 %261 }
  0xd4   : > { %v264_v3 = vmul.f32 0.03125, %v262_v2 }
  0xd6   : > { %v265_v4 = vsub.f32 %v256_v0, %v264_v3 }
  0xd8   : > { %v266_v5 = vmul.f32 %v265_v4, %v265_v4 }
  0xda   : > { %v267_v6 = vsel %vm259_vm0, %v266_v5, 0.0 }
  0xdb   : > { %268 = vadd.xlane.f32.xlu0 %v267_v6 }
 0x164   : > { %v269_v10 = vpop.xlane.xlu0 %268 }
 0x165   : > { %v270_v11 = vmul.f32 0.03125, %v269_v10 }
 0x167   : > { %v271_v12 = vadd.f32 1e-05, %v270_v11 }
 0x169   : > { %546 = vrsqrt.f32 %v271_v12 }
 0x176   : > { %v547_v13 = vpop.eup %546 }
 0x177   : > { %v273_v15 = vmul.f32 %v547_v13, %v265_v4 }
 0x179   : > { %v280_v17 = vmul.f32 %v462_v14, %v273_v15 }
 0x17b   : > { %v287_v18 = vadd.f32 %v463_v16, %v280_v17 }
 0x17d   : > { %v288_v19 = vpack.c.bf16 %v287_v18, %v287_v18 }
 0x17f   : > { %480 = vmatmul.mubr.msk.bf16.vlgmr.msra.gmra.mxu0 %vm259_vm0, %v288_v19 }
 0x23f   : > { %v349_v21 = vpop.f32.mrf.mxu0 }
 0x240   : > { %v350_v22 = vadd.f32 %v464_v20, %v349_v21 }
 0x241   : > { %v481_v23 = vpop.f32.mrf.mxu0 }
 0x242   : > { %v355_v24 = vpack.c.bf16 %v350_v22, %v350_v22 }
 0x243   : > { %v352_v25 = vpop.f32.mrf.mxu0 }
 0x244   : > { %357 = vst.msk [vmem:[%s254_s23] sm:$0xf] %vm356_vm2, %v355_v24 }
 0x245   : > { %v482_v26 = vpop.f32.mrf.mxu0 }
 0x246   : > { %615 = shalt.err (!%p612_p0)
}
 0x247   : > { %s616_s29 = scalar_lea.hbm %s845_s10, 64  ;;  %s620_s7 = scalar_lea.hbm %s893_s5, 128 }
 0x248   : > { %p617_p5 = scmp.ne.s32.totalorder %s845_s10, %s616_s29  ;;  %p621_p1 = scmp.lt.s32.totalorder %s845_s10, %s893_s5 }
 0x249   : > { %p622_p4 = scmp.lt.s32.totalorder %s620_s7, %s616_s29 }
 0x24a   : > { %p618_p9 = pnand %p617_p5, %p909_p3 }
 0x24b   : > { %p623_p6 = por %p622_p4, %p621_p1 }
 0x24c   : > { %p619_p12 = pneg %p618_p9 }
 0x24e   : > { %p624_p8 = pnand %p623_p6, %p619_p12 }
 0x250   : > { %627 = shalt.err (!%p624_p8)
}
 0x251   : > { %489 = dma.vmem_to_hbm [thread:$0]  (%p909_p3), %s847_s15, 64, %s845_s10, %s359_s22  }
 0x252 PF: > { %s384_s17 = sand.u32 1, %s658_s18   ;;  %p910_p11 = scmp.ne.s32.totalorder %s899_s25, 0 }
 0x253   : > { %p911_p7 = scmp.ge.s32.totalorder %s670_s21, 2  ;;  %s385_s23 = scalar_lea.sflag [#allocation4], %s384_s17 }
 0x255   : > { %p500_p10 = pnand %p911_p7, %p910_p11 }
 0x257   : > { %p501_p2 = pneg %p500_p10 }
 0x259   : > { %653 = dma.done.wait (%p501_p2), %s385_s23, 64  }
 0x25a   : > { %655 = vsyncadd (%p501_p2), %s385_s23, 4294967232  ;;  %p19_p13 = scmp.ge.s32.totalorder %s763_s30, 4   ;;  %s912_s18 = smov %s662_s19 }
 0x25b   : > { %s913_s19 = smov %s666_s20  ;;  %s914_s20 = smov %s780_s13 }
 0x25c   : > { %s915_s21 = smov %s763_s30  ;;  %21 = sbr.rel (!%p19_p13) target bundleno = 6 (0x6), region = 89 }
 0x261   :  { %390 = vsyncpa [#allocation3], 1 }
 0x262   :  { %392 = vsyncpa [#allocation3 + $0x1], 1 }
 0x263   :  { %393 = vsyncpa [#allocation6], 1 }
 0x264   :  { %394 = vsyncpa [#allocation4], 1 }
 0x265   :  { %396 = vsyncpa [#allocation4 + $0x1], 1 }

</bundles_post_ra>
